<compile_context>
chip_gen: v6e
topology: v6e:2x2x1
jax: 0.10.0
libtpu: 0.0.40
codegen_flags: <defaults>
</compile_context>

<pallas_src>
import functools

import jax
import jax.numpy as jnp
import numpy as np
from jax.experimental import pallas as pl
from jax.experimental.pallas import tpu as pltpu


def _log_sigmoid(x):
    # Numerically stable log(sigmoid(x)), matching nn.LogSigmoid semantics.
    return jnp.minimum(x, 0.0) - jnp.log(1.0 + jnp.exp(-jnp.abs(x)))


def skipgram_neg_kernel(center_ref, outside_ref, neg_ref, loss_ref, acc_ref,
                        *, inv_batch):
    # center_ref / outside_ref: (TB, E) f32 in VMEM
    # neg_ref:                  (TB, K, E) f32 in VMEM
    # loss_ref:                 (1, 1) f32 output (written on last grid step)
    # acc_ref:                  (1, 1) f32 VMEM scratch accumulator
    b = pl.program_id(0)
    nb = pl.num_programs(0)

    @pl.when(b == 0)
    def _init():
        acc_ref[...] = jnp.zeros_like(acc_ref)

    c = center_ref[...]                                        # (TB, E)
    o = outside_ref[...]                                       # (TB, E)
    n = neg_ref[...]                                           # (TB, K, E)

    # uovc_b = <outside_b, center_b>
    uovc = jnp.sum(o * c, axis=-1, keepdims=True)              # (TB, 1)

    # ukvc_sum_b = sum_k -<neg_bk, center_b> = -<sum_k neg_bk, center_b>
    neg_sum = jnp.sum(n, axis=1)                               # (TB, E)
    ukvc_sum = -jnp.sum(neg_sum * c, axis=-1, keepdims=True)   # (TB, 1)

    loss_rows = _log_sigmoid(uovc) + _log_sigmoid(ukvc_sum)    # (TB, 1)

    # Accumulate the per-row loss sum across batch tiles.
    acc_ref[...] += jnp.sum(loss_rows, keepdims=True)          # (1, 1)

    @pl.when(b == nb - 1)
    def _finalize():
        loss_ref[...] = -(acc_ref[...] * inv_batch)


def _pick_block_b(batch, cap=128):
    # Largest power-of-two divisor of batch, capped (keeps f32 sublane alignment
    # when possible and amortizes per-grid-step overhead for big batches).
    blk = 1
    while blk * 2 <= min(batch, cap) and batch % (blk * 2) == 0:
        blk *= 2
    return blk


def skipgram_neg_loss(emb_center, emb_outside, center, outside, negative,
                      *, block_b=None):
    """emb_center/emb_outside: (V, E) f32; center/outside: (B, 1) int32;
    negative: (B, K) int32.  Returns the scalar SkipgramNeg loss."""
    B = center.shape[0]
    K = negative.shape[1]
    V, E = emb_center.shape

    if block_b is None:
        block_b = _pick_block_b(B)
    assert B % block_b == 0
    num_blocks = B // block_b

    # Glue: tiny embedding gathers (B + B + B*K rows) in plain JAX.  The full
    # table is never materialized per batch row.
    center_emb = jnp.take(emb_center, center[:, 0], axis=0)                  # (B, E)
    outside_emb = jnp.take(emb_outside, outside[:, 0], axis=0)               # (B, E)
    negative_emb = jnp.take(emb_outside, negative.reshape(-1), axis=0)       # (B*K, E)
    negative_emb = negative_emb.reshape(B, K, E)                             # (B, K, E)

    out = pl.pallas_call(
        functools.partial(skipgram_neg_kernel, inv_batch=1.0 / B),
        out_shape=jax.ShapeDtypeStruct((1, 1), jnp.float32),
        grid_spec=pltpu.PrefetchScalarGridSpec(
            num_scalar_prefetch=0,
            grid=(num_blocks,),
            in_specs=[
                pl.BlockSpec((block_b, E), lambda i: (i, 0)),
                pl.BlockSpec((block_b, E), lambda i: (i, 0)),
                pl.BlockSpec((block_b, K, E), lambda i: (i, 0, 0)),
            ],
            out_specs=pl.BlockSpec((1, 1), lambda i: (0, 0)),
            scratch_shapes=[pltpu.VMEM((1, 1), jnp.float32)],
        ),
        compiler_params=pltpu.CompilerParams(
            dimension_semantics=("arbitrary",)),
    )(center_emb, outside_emb, negative_emb)
    return out[0, 0]


def skipgram_neg_loss_ref(emb_center, emb_outside, center, outside, negative):
    # Pure-JAX reference mirroring the PyTorch forward (op-for-op order).
    B, K = negative.shape
    E = emb_center.shape[1]
    c = jnp.take(emb_center, center[:, 0], axis=0)                            # (B, E)
    o = jnp.take(emb_outside, outside[:, 0], axis=0)                          # (B, E)
    n = jnp.take(emb_outside, negative.reshape(-1), axis=0).reshape(B, K, E)  # (B, K, E)
    uovc = jnp.sum(o * c, axis=-1, keepdims=True)                             # (B, 1)
    ukvc = -jnp.einsum('bke,be->bk', n, c)                                    # (B, K)
    ukvc_sum = jnp.sum(ukvc, axis=1, keepdims=True)                           # (B, 1)
    loss = _log_sigmoid(uovc) + _log_sigmoid(ukvc_sum)                        # (B, 1)
    return -jnp.mean(loss)


if __name__ == "__main__":
    # Small, deterministic synthetic setup consistent with the module.
    VOC_SIZE = 256
    EMB_SIZE = 128
    B = 16          # batch of (center, outside) pairs -> 2 grid steps of 8 rows
    K = 8           # negative samples per pair

    key = jax.random.PRNGKey(0)
    k_c, k_o, k_ci, k_oi, k_ni = jax.random.split(key, 5)

    # Deterministic parameter init (scaled normal, like nn.Embedding but tamed).
    embedding_center = 0.1 * jax.random.normal(
        k_c, (VOC_SIZE, EMB_SIZE), dtype=jnp.float32)
    embedding_outside = 0.1 * jax.random.normal(
        k_o, (VOC_SIZE, EMB_SIZE), dtype=jnp.float32)

    center = jax.random.randint(k_ci, (B, 1), 0, VOC_SIZE, dtype=jnp.int32)
    outside = jax.random.randint(k_oi, (B, 1), 0, VOC_SIZE, dtype=jnp.int32)
    negative = jax.random.randint(k_ni, (B, K), 0, VOC_SIZE, dtype=jnp.int32)

    loss = jax.block_until_ready(
        skipgram_neg_loss(embedding_center, embedding_outside,
                          center, outside, negative, block_b=8))
    loss_ref = jax.block_until_ready(
        skipgram_neg_loss_ref(embedding_center, embedding_outside,
                              center, outside, negative))

    np.testing.assert_allclose(np.asarray(loss), np.asarray(loss_ref),
                               rtol=1e-5, atol=1e-5)
    print("KERNEL_OK")
</pallas_src>

<mosaic_0001>
module attributes {stable_mosaic.version = 11 : i64} {
  func.func @skipgram_neg_kernel(%arg0: i32, %arg1: memref<8x128xf32, #tpu.memory_space<vmem>>, %arg2: memref<8x128xf32, #tpu.memory_space<vmem>>, %arg3: memref<8x8x128xf32, #tpu.memory_space<vmem>>, %arg4: memref<1x1xf32, #tpu.memory_space<vmem>>, %arg5: memref<1x1xf32, #tpu.memory_space<vmem>>) attributes {dimension_semantics = [#tpu.dimension_semantics<arbitrary>], iteration_bounds = array<i64: 2>, scalar_prefetch = 0 : i64, scratch_operands = 1 : i64, tpu.core_type = #tpu.core_type<tc>, window_params = [{transform_indices = @transform_0, window_bounds = array<i64: 8, 128>}, {transform_indices = @transform_1, window_bounds = array<i64: 8, 128>}, {transform_indices = @transform_2, window_bounds = array<i64: 8, 8, 128>}, {pipeline_mode = #tpu.pipeline_mode<synchronous>, transform_indices = @transform_3, window_bounds = array<i64: 1, 1>}]} {
    %c0_i32 = arith.constant 0 : i32
    %0 = arith.cmpi eq, %arg0, %c0_i32 : i32
    %1 = arith.extui %0 : i1 to i32
    %c0_i32_0 = arith.constant 0 : i32
    %2 = arith.cmpi ne, %1, %c0_i32_0 : i32
    scf.if %2 {
      %cst_22 = arith.constant 0.000000e+00 : f32
      %47 = vector.broadcast %cst_22 : f32 to vector<1x1xf32>
      %c0_23 = arith.constant 0 : index
      %c0_24 = arith.constant 0 : index
      %48 = vector.load %arg5[%c0_23, %c0_24] : memref<1x1xf32, #tpu.memory_space<vmem>>, vector<1x1xf32>
      tpu.vector_store %arg5[%c0_23, %c0_24], %47 {strides = array<i32>} : memref<1x1xf32, #tpu.memory_space<vmem>>, vector<1x1xf32>,
    } else {
    }
    %c0 = arith.constant 0 : index
    %c0_1 = arith.constant 0 : index
    %3 = vector.load %arg1[%c0, %c0_1] : memref<8x128xf32, #tpu.memory_space<vmem>>, vector<8x128xf32>
    %c0_2 = arith.constant 0 : index
    %c0_3 = arith.constant 0 : index
    %4 = vector.load %arg2[%c0_2, %c0_3] : memref<8x128xf32, #tpu.memory_space<vmem>>, vector<8x128xf32>
    %c0_4 = arith.constant 0 : index
    %c0_5 = arith.constant 0 : index
    %c0_6 = arith.constant 0 : index
    %5 = vector.load %arg3[%c0_4, %c0_5, %c0_6] : memref<8x8x128xf32, #tpu.memory_space<vmem>>, vector<8x8x128xf32>
    %6 = arith.mulf %4, %3 : vector<8x128xf32>
    %cst = arith.constant dense<0.000000e+00> : vector<8xf32>
    %7 = vector.multi_reduction <add>, %6, %cst [1] : vector<8x128xf32> to vector<8xf32>
    %8 = vector.shape_cast %7 : vector<8xf32> to vector<8x1xf32>
    %cst_7 = arith.constant dense<0.000000e+00> : vector<8x128xf32>
    %9 = vector.multi_reduction <add>, %5, %cst_7 [1] : vector<8x8x128xf32> to vector<8x128xf32>
    %10 = arith.mulf %9, %3 : vector<8x128xf32>
    %cst_8 = arith.constant dense<0.000000e+00> : vector<8xf32>
    %11 = vector.multi_reduction <add>, %10, %cst_8 [1] : vector<8x128xf32> to vector<8xf32>
    %12 = vector.shape_cast %11 : vector<8xf32> to vector<8x1xf32>
    %cst_9 = arith.constant 0.000000e+00 : f32
    %13 = vector.broadcast %cst_9 : f32 to vector<8x1xf32>
    %14 = arith.subf %13, %12 : vector<8x1xf32>
    %cst_10 = arith.constant 0.000000e+00 : f32
    %15 = vector.broadcast %cst_10 : f32 to vector<8x1xf32>
    %16 = arith.minimumf %8, %15 : vector<8x1xf32>
    %17 = math.absf %8 : vector<8x1xf32>
    %cst_11 = arith.constant 0.000000e+00 : f32
    %18 = vector.broadcast %cst_11 : f32 to vector<8x1xf32>
    %19 = arith.subf %18, %17 : vector<8x1xf32>
    %20 = math.exp %19 : vector<8x1xf32>
    %cst_12 = arith.constant 1.000000e+00 : f32
    %21 = vector.broadcast %cst_12 : f32 to vector<8x1xf32>
    %22 = arith.addf %21, %20 : vector<8x1xf32>
    %23 = math.log %22 : vector<8x1xf32>
    %24 = arith.subf %16, %23 : vector<8x1xf32>
    %cst_13 = arith.constant 0.000000e+00 : f32
    %25 = vector.broadcast %cst_13 : f32 to vector<8x1xf32>
    %26 = arith.minimumf %14, %25 : vector<8x1xf32>
    %27 = math.absf %14 : vector<8x1xf32>
    %cst_14 = arith.constant 0.000000e+00 : f32
    %28 = vector.broadcast %cst_14 : f32 to vector<8x1xf32>
    %29 = arith.subf %28, %27 : vector<8x1xf32>
    %30 = math.exp %29 : vector<8x1xf32>
    %cst_15 = arith.constant 1.000000e+00 : f32
    %31 = vector.broadcast %cst_15 : f32 to vector<8x1xf32>
    %32 = arith.addf %31, %30 : vector<8x1xf32>
    %33 = math.log %32 : vector<8x1xf32>
    %34 = arith.subf %26, %33 : vector<8x1xf32>
    %35 = arith.addf %24, %34 : vector<8x1xf32>
    %c0_16 = arith.constant 0 : index
    %c0_17 = arith.constant 0 : index
    %36 = vector.load %arg5[%c0_16, %c0_17] : memref<1x1xf32, #tpu.memory_space<vmem>>, vector<1x1xf32>
    %37 = vector.shape_cast %35 : vector<8x1xf32> to vector<1x8x1xf32>
    %cst_18 = arith.constant dense<0.000000e+00> : vector<1xf32>
    %38 = vector.multi_reduction <add>, %37, %cst_18 [1, 2] : vector<1x8x1xf32> to vector<1xf32>
    %39 = vector.shape_cast %38 : vector<1xf32> to vector<1x1x1xf32>
    %40 = vector.extract %39[0, 0, 0] : f32 from vector<1x1x1xf32>
    %41 = vector.broadcast %40 : f32 to vector<1x1xf32>
    %42 = arith.addf %36, %41 : vector<1x1xf32>
    %c0_19 = arith.constant 0 : index
    %c0_20 = arith.constant 0 : index
    %43 = vector.load %arg5[%c0_19, %c0_20] : memref<1x1xf32, #tpu.memory_space<vmem>>, vector<1x1xf32>
    tpu.vector_store %arg5[%c0_19, %c0_20], %42 {strides = array<i32>} : memref<1x1xf32, #tpu.memory_space<vmem>>, vector<1x1xf32>,
    %c1_i32 = arith.constant 1 : i32
    %44 = arith.cmpi eq, %arg0, %c1_i32 : i32
    %45 = arith.extui %44 : i1 to i32
    %c0_i32_21 = arith.constant 0 : i32
    %46 = arith.cmpi ne, %45, %c0_i32_21 : i32
    scf.if %46 {
      %c0_22 = arith.constant 0 : index
      %c0_23 = arith.constant 0 : index
      %47 = vector.load %arg5[%c0_22, %c0_23] : memref<1x1xf32, #tpu.memory_space<vmem>>, vector<1x1xf32>
      %cst_24 = arith.constant 6.250000e-02 : f32
      %48 = vector.broadcast %cst_24 : f32 to vector<1x1xf32>
      %49 = arith.mulf %47, %48 : vector<1x1xf32>
      %cst_25 = arith.constant 0.000000e+00 : f32
      %50 = vector.broadcast %cst_25 : f32 to vector<1x1xf32>
      %51 = arith.subf %50, %49 : vector<1x1xf32>
      %c0_26 = arith.constant 0 : index
      %c0_27 = arith.constant 0 : index
      %52 = vector.load %arg4[%c0_26, %c0_27] : memref<1x1xf32, #tpu.memory_space<vmem>>, vector<1x1xf32>
      tpu.vector_store %arg4[%c0_26, %c0_27], %51 {strides = array<i32>} : memref<1x1xf32, #tpu.memory_space<vmem>>, vector<1x1xf32>,
    } else {
    }
    return
  }
  func.func @transform_0(%arg0: i32) -> (i32, i32) {
    %c0_i32 = arith.constant 0 : i32
    %c0_i32_0 = arith.constant 0 : i32
    return %arg0, %c0_i32 : i32, i32
  }
  func.func @transform_1(%arg0: i32) -> (i32, i32) {
    %c0_i32 = arith.constant 0 : i32
    %c0_i32_0 = arith.constant 0 : i32
    return %arg0, %c0_i32 : i32, i32
  }
  func.func @transform_2(%arg0: i32) -> (i32, i32, i32) {
    %c0_i32 = arith.constant 0 : i32
    %c0_i32_0 = arith.constant 0 : i32
    %c0_i32_1 = arith.constant 0 : i32
    return %arg0, %c0_i32, %c0_i32_0 : i32, i32, i32
  }
  func.func @transform_3(%arg0: i32) -> (i32, i32) {
    %c0_i32 = arith.constant 0 : i32
    %c0_i32_0 = arith.constant 0 : i32
    %c0_i32_1 = arith.constant 0 : i32
    return %c0_i32, %c0_i32_0 : i32, i32
  }
}

</mosaic_0001>

<bundles_post_ra>
// kernel: tpu_custom_call.1
= control target key start
LH: loop header
LB: loop body
LE: loop exit
PB: predicated region body
PF: predicated region fallthrough
CT: control target
= control target key end

     0   :  { %8 = vsyncpa [#allocation4], 0  ;;  %s987_s0 = inlined_call_operand.hbm [shape: f32[16,128], index: 0, kind: input, shape index: {}]   ;;  %s988_s1 = inlined_call_operand.hbm [shape: f32[16,128], index: 1, kind: input, shape index: {}]   ;;  %s989_s2 = inlined_call_operand.hbm [shape: f32[16,8,128], index: 2, kind: input, shape index: {}]   ;;  %s990_s3 = inlined_call_operand.hbm [shape: f32[1,1], index: 3, kind: output, shape index: {}]  }
   0x1   :  { %10 = vsyncpa [#allocation4 + $0x1], 0 }
   0x2   :  { %11 = vsyncpa [#allocation7], 0 }
   0x3   :  { %13 = vsyncpa [#allocation7 + $0x1], 0 }
   0x4   :  { %14 = vsyncpa [#allocation5], 0  ;;  %s785_s12 = smov 0   ;;  %s787_s13 = smov 0  }
   0x5   :  { %s789_s14 = smov 0   ;;  %s791_s15 = smov 0  }
   0x6 LB: > { %s804_s16 = sadd.s32 4294967295, %s756_s15   ;;  %s807_s17 = sadd.s32 1, %s756_s15   ;;  %s756_s15 = sphi %s791_s15, %s1001_s15   ;;  %s752_s14 = sphi %s789_s14, %s1000_s14   ;;  %s748_s13 = sphi %s787_s13, %s999_s13   ;;  %s744_s12 = sphi %s785_s12, %s998_s12  }
   0x7   : > { %s24_s18 = ssub.s32 %s756_s15, %s807_s17  ;;  %s27_s19 = sadd.s32 1, %s752_s14 }
   0x8   : > { %p25_p0 = scmp.eq.s32.totalorder %s24_s18, 0  ;;  %p34_p1 = scmp.ne.s32.totalorder %s752_s14, %s748_s13 }
   0x9   : > { %p35_p2 = scmp.eq.s32.totalorder %s756_s15, 0  ;;  %p40_p3 = scmp.ne.s32.totalorder %s748_s13, %s744_s12 }
   0xa   : > { %s817_s20 = scalar_select %p25_p0, %s752_s14, %s27_s19  }
   0xb   : > { %p36_p4 = por %p35_p2, %p34_p1  ;;  %p41_p5 = scmp.eq.s32.totalorder %s804_s16, 0 }
   0xc   : > { %p559_p6 = scmp.lt.s32.totalorder %s756_s15, 2  ;;  %s826_s22 = sand.u32 1, %s752_s14  }
   0xd   : > { %p821_p7 = por %p41_p5, %p40_p3  ;;  %s519_s23 = sshll.u32 %s826_s22, 3 }
   0xe   : > { %s520_s24 = sshll.u32 %s756_s15, 7  ;;  %p830_p8 = pnand %p559_p6, %p36_p4 }
   0xf   : > { %s992_s21 = scalar_select %p821_p7, 1, 0 }
  0x10   : > { %s155_s26 = sand.u32 1, %s756_s15   ;;  %s840_s29 = scalar_lea.hbm %s988_s1, %s520_s24 }
  0x11   : > { %s159_s30 = scalar_lea.vmem [#allocation6], %s519_s23  ;;  %s523_s5 = sshll.u32 %s826_s22, 6 }
  0x12   : > { %s166_s4 = sshll.u32 %s159_s30, 4  ;;  %s845_s6 = scalar_lea.sflag [#allocation7], %s155_s26  ;;  %s167_s4 = int_to_ptr.vmem [resolvable:$true] %s166_s4 }
  0x13   : > { %s606_s7 = scalar_lea.hbm %s840_s29, 128  ;;  %p851_p10 = pneg %p830_p8 }
  0x14   : > { %p607_p9 = scmp.ne.s32.totalorder %s840_s29, %s606_s7  ;;  %s611_s11 = scalar_lea.hbm %s988_s1, 256 }
  0x15   : > { %p612_p13 = scmp.lt.s32.totalorder %s840_s29, %s988_s1  ;;  %p613_p0 = scmp.lt.s32.totalorder %s611_s11, %s606_s7 }
  0x16   : > { %p609_p11 = pnand %p851_p10, %p607_p9 }
  0x17   : > { %p614_p1 = por %p613_p0, %p612_p13 }
  0x18   : > { %p610_p12 = pneg %p609_p11 }
  0x1a   : > { %p615_p2 = pnand %p614_p1, %p610_p12 }
  0x1c   : > { %618 = shalt.err (!%p615_p2)
}
  0x1d   : > { %s619_s19 = scalar_lea.vmem %s167_s4, 128  ;;  %s758_s26 = smov [#allocation6]  }
  0x1e   : > { %p620_p3 = scmp.ne.s32.totalorder %s167_s4, %s619_s19  ;;  %s624_s27 = sshll.u32 %s758_s26, 4  ;;  %s625_s27 = int_to_ptr.vmem [resolvable:$false] %s624_s27 }
  0x1f   : > { %s626_s28 = scalar_lea.vmem %s625_s27, 256  ;;  %p627_p6 = scmp.lt.s32.totalorder %s167_s4, %s625_s27 }
  0x20   : > { %p622_p4 = pnand %p620_p3, %p851_p10  ;;  %p628_p9 = scmp.lt.s32.totalorder %s626_s28, %s619_s19 }
  0x22   : > { %p623_p5 = pneg %p622_p4  ;;  %p629_p11 = por %p628_p9, %p627_p6 }
  0x24   : > { %p630_p7 = pnand %p629_p11, %p623_p5 }
  0x26   : > { %633 = shalt.err (!%p630_p7)
}
  0x27   : > { %555 = dma.hbm_to_vmem [thread:$0]  (!%p830_p8), %s840_s29, 128, %s167_s4, %s845_s6  }
  0x28   : > { %s177_s30 = scalar_lea.vmem [#allocation8], %s523_s5  ;;  %p526_p12 = scmp.ge.s32.totalorder %s756_s15, 1 }
  0x29   : > { %s184_s7 = sshll.u32 %s177_s30, 4  ;;  %p192_p7 = scmp.lt.s32.totalorder %s756_s15, 3  ;;  %s873_s7 = int_to_ptr.vmem [resolvable:$true] %s184_s7 }
  0x2a   : > { %s885_s12 = scalar_lea.hbm %s987_s0, %s520_s24  ;;  %s141_s29 = scalar_lea.vmem [#allocation3], %s519_s23 }
  0x2b   : > { %p876_p13 = pnand %p526_p12, %p192_p7  ;;  %s148_s4 = sshll.u32 %s141_s29, 4  ;;  %s149_s4 = int_to_ptr.vmem [resolvable:$true] %s148_s4 }
  0x2c   : > { %s536_s5 = sshll.u32 %s756_s15, 10  ;;  %s138_s27 = scalar_lea.sflag [#allocation4], %s826_s22 }
  0x2d   : > { %s995_s9 = scalar_select %p876_p13, 1, 0 }
  0x2e   : > { %s893_s26 = scalar_lea.hbm %s989_s2, %s536_s5  ;;  %s634_s28 = scalar_lea.hbm %s885_s12, 128 }
  0x2f   : > { %p635_p0 = scmp.ne.s32.totalorder %s885_s12, %s634_s28  ;;  %s639_s10 = scalar_lea.hbm %s987_s0, 256 }
  0x30   : > { %p640_p3 = scmp.lt.s32.totalorder %s885_s12, %s987_s0  ;;  %p641_p4 = scmp.lt.s32.totalorder %s639_s10, %s634_s28 }
  0x31   : > { %p637_p1 = pnand %p635_p0, %p851_p10 }
  0x32   : > { %p642_p5 = por %p641_p4, %p640_p3 }
  0x33   : > { %p638_p2 = pneg %p637_p1 }
  0x35   : > { %p643_p6 = pnand %p642_p5, %p638_p2 }
  0x37   : > { %646 = shalt.err (!%p643_p6)
}
  0x38   : > { %s647_s15 = scalar_lea.vmem %s149_s4, 128  ;;  %s759_s22 = smov [#allocation3]  }
  0x39   : > { %p648_p9 = scmp.ne.s32.totalorder %s149_s4, %s647_s15  ;;  %s652_s29 = sshll.u32 %s759_s22, 4  ;;  %s653_s29 = int_to_ptr.vmem [resolvable:$false] %s652_s29 }
  0x3a   : > { %s654_s5 = scalar_lea.vmem %s653_s29, 256  ;;  %p655_p7 = scmp.lt.s32.totalorder %s149_s4, %s653_s29 }
  0x3b   : > { %p650_p11 = pnand %p648_p9, %p851_p10  ;;  %p656_p0 = scmp.lt.s32.totalorder %s654_s5, %s647_s15 }
  0x3d   : > { %p651_p12 = pneg %p650_p11  ;;  %p657_p1 = por %p656_p0, %p655_p7 }
  0x3f   : > { %p658_p13 = pnand %p657_p1, %p651_p12 }
  0x41   : > { %661 = shalt.err (!%p658_p13)
}
  0x42   : > { %552 = dma.hbm_to_vmem [thread:$0]  (!%p830_p8), %s885_s12, 128, %s149_s4, %s138_s27  }
  0x43   : > { %s662_s18 = scalar_lea.hbm %s893_s26, 1024  ;;  %s667_s24 = scalar_lea.hbm %s989_s2, 2048 }
  0x44   : > { %p663_p2 = scmp.ne.s32.totalorder %s893_s26, %s662_s18  ;;  %p668_p13 = scmp.lt.s32.totalorder %s893_s26, %s989_s2 }
  0x45   : > { %p669_p5 = scmp.lt.s32.totalorder %s667_s24, %s662_s18 }
  0x46   : > { %p665_p3 = pnand %p663_p2, %p851_p10 }
  0x47   : > { %p670_p6 = por %p669_p5, %p668_p13 }
  0x48   : > { %p666_p4 = pneg %p665_p3 }
  0x4a   : > { %p671_p9 = pnand %p670_p6, %p666_p4 }
  0x4c   : > { %674 = shalt.err (!%p671_p9)
}
  0x4d   : > { %s675_s12 = scalar_lea.vmem %s873_s7, 1024  ;;  %s760_s4 = smov [#allocation8]  }
  0x4e   : > { %p676_p11 = scmp.ne.s32.totalorder %s873_s7, %s675_s12  ;;  %s680_s27 = sshll.u32 %s760_s4, 4  ;;  %s681_s27 = int_to_ptr.vmem [resolvable:$false] %s680_s27 }
  0x4f   : > { %s682_s11 = scalar_lea.vmem %s681_s27, 2048  ;;  %p683_p0 = scmp.lt.s32.totalorder %s873_s7, %s681_s27 }
  0x50   : > { %p678_p12 = pnand %p676_p11, %p851_p10  ;;  %p684_p1 = scmp.lt.s32.totalorder %s682_s11, %s675_s12 }
  0x52   : > { %p679_p7 = pneg %p678_p12  ;;  %p685_p2 = por %p684_p1, %p683_p0 }
  0x54   : > { %p686_p3 = pnand %p685_p2, %p679_p7 }
  0x56   : > { %689 = shalt.err (!%p686_p3)
}
  0x57   : > { %s761_s23 = smov 128   ;;  %s762_s15 = smov 8  }
  0x58   : > { %558 = dma.hbm_to_vmem [thread:$0]  (!%p830_p8), %s893_s26, 1024, %s873_s7, %s845_s6, %s761_s23, %s761_s23, %s762_s15  }
  0x59   : > { %p996_p10 = scmp.ne.s32.totalorder %s995_s9, 0 }
  0x5a   : > { %s198_s8 = sand.u32 (!%p996_p10), 1, %s748_s13   ;;  %p997_p4 = scmp.ne.s32.totalorder (!%p996_p10), %s992_s21, 0 }
  0x5b   : > { %196 = sbr.rel (%p996_p10) target bundleno = 551 (0x227), region = 32  ;;  %s527_s22 = sshll.u32 (!%p996_p10), %s198_s8, 3 }
  0x5c   : > { %s199_s29 = scalar_lea.sflag (!%p996_p10), [#allocation4], %s198_s8  ;;  %s202_s5 = scalar_lea.vmem (!%p996_p10), [#allocation3], %s527_s22 }
  0x60   : > { %731 = dma.done.wait (%p997_p4), %s199_s29, 128  }
  0x61   : > { %733 = vsyncadd (%p997_p4), %s199_s29, 4294967168  ;;  %s207_s18 = sand.u32 1, %s804_s16   ;;  %s941_s25 = scalar_lea.vmem [#allocation6], %s527_s22 }
  0x62   : > { %s208_s19 = scalar_lea.sflag [#allocation7], %s207_s18 }
  0x63   : > { %735 = dma.done.wait (%p997_p4), %s208_s19, 1152  }
  0x64   : > { %737 = vsyncadd (%p997_p4), %s208_s19, 4294966144  ;;  %s529_s6 = sshll.u32 %s198_s8, 6  ;;  %p530_p8 = scmp.ne.s32.totalorder %s804_s16, 0 }
  0x65   : > { %s220_s7 = scalar_lea.vmem [#allocation8], %s529_s6 }
  0x66   : > { %252 = sbr.rel (%p530_p8) target bundleno = 109 (0x6d), region = 48 }
  0x6b   : > { %vm253_vm0 = vcmask 0   ;;  %v763_v0 = vmov 0.0  }
  0x6c   : > { %254 = vst.msk [vmem:[#allocation2] sm:$0x1] %vm253_vm0, %v763_v0 }
  0x6d PF: > { %v948_v1 = vld [vmem:[%s202_s5] sm:$0xff]  ;;  %v259_v4 = vld [vmem:[%s220_s7 + $0x10] sm:$0xff]  ;;  %v260_v5 = vld [vmem:[%s220_s7 + $0x18] sm:$0xff]  ;;  %vm349_vm1 = vcmask 1041409   ;;  %vm352_vm2 = vcmask 1042434   ;;  %vm355_vm3 = vcmask 1043459  }
  0x6e   : > { %v257_v2 = vld [vmem:[%s220_s7] sm:$0xff]  ;;  %v258_v3 = vld [vmem:[%s220_s7 + $0x8] sm:$0xff]  ;;  %v317_v9 = vrot.slane %v948_v1, 1  ;;  %v263_v11 = vld [vmem:[%s220_s7 + $0x30] sm:$0xff]  ;;  %v280_v13 = vrot.slane %v259_v4, 4  ;;  %v286_v14 = vrot.slane %v260_v5, 4 }
  0x6f   : > { %v261_v6 = vld [vmem:[%s220_s7 + $0x20] sm:$0xff]  ;;  %v268_v7 = vrot.slane %v257_v2, 4  ;;  %v274_v8 = vrot.slane %v258_v3, 4  ;;  %v262_v10 = vld [vmem:[%s220_s7 + $0x28] sm:$0xff]  ;;  %v264_v12 = vld [vmem:[%s220_s7 + $0x38] sm:$0xff]  ;;  %v304_v19 = vrot.slane %v263_v11, 4 }
  0x70   : > { %v292_v15 = vrot.slane %v261_v6, 4  ;;  %v298_v18 = vrot.slane %v262_v10, 4  ;;  %v281_v20 = vadd.f32 %v280_v13, %v259_v4  ;;  %v287_v21 = vadd.f32 %v286_v14, %v260_v5  ;;  %p531_p13 = scmp.ne.s32.totalorder %s804_s16, 1 }
  0x71   : > { %v269_v16 = vadd.f32 %v268_v7, %v257_v2  ;;  %v275_v17 = vadd.f32 %v274_v8, %v258_v3  ;;  %v310_v23 = vrot.slane %v264_v12, 4  ;;  %v305_v27 = vadd.f32 %v304_v19, %v263_v11 }
  0x72   : > { %v293_v22 = vadd.f32 %v292_v15, %v261_v6  ;;  %v299_v26 = vadd.f32 %v298_v18, %v262_v10  ;;  %v282_v28 = vrot.slane %v281_v20, 2  ;;  %v288_v29 = vrot.slane %v287_v21, 2 }
  0x73   : > { %v270_v24 = vrot.slane %v269_v16, 2  ;;  %v276_v25 = vrot.slane %v275_v17, 2  ;;  %v311_v31 = vadd.f32 %v310_v23, %v264_v12  ;;  %v306_v35 = vrot.slane %v305_v27, 2 }
  0x74   : > { %v294_v30 = vrot.slane %v293_v22, 2  ;;  %v300_v34 = vrot.slane %v299_v26, 2  ;;  %v283_v36 = vadd.f32 %v282_v28, %v281_v20  ;;  %v289_v37 = vadd.f32 %v288_v29, %v287_v21 }
  0x75   : > { %v271_v32 = vadd.f32 %v270_v24, %v269_v16  ;;  %v277_v33 = vadd.f32 %v276_v25, %v275_v17  ;;  %v312_v39 = vrot.slane %v311_v31, 2  ;;  %v307_v43 = vadd.f32 %v306_v35, %v305_v27 }
  0x76   : > { %v295_v38 = vadd.f32 %v294_v30, %v293_v22  ;;  %v301_v42 = vadd.f32 %v300_v34, %v299_v26  ;;  %v284_v44 = vrot.slane %v283_v36, 1  ;;  %v290_v45 = vrot.slane %v289_v37, 1  ;;  %v256_v22 = vld [vmem:[%s941_s25] sm:$0xff] }
  0x77   : > { %v272_v40 = vrot.slane %v271_v32, 1  ;;  %v278_v41 = vrot.slane %v277_v33, 1  ;;  %v313_v47 = vadd.f32 %v312_v39, %v311_v31  ;;  %v308_v51 = vrot.slane %v307_v43, 1 }
  0x78   : > { %v296_v46 = vrot.slane %v295_v38, 1  ;;  %v302_v50 = vrot.slane %v301_v42, 1  ;;  %v285_v52 = vadd.f32 %v284_v44, %v283_v36  ;;  %v291_v53 = vadd.f32 %v290_v45, %v289_v37 }
  0x79   : > { %v273_v48 = vadd.f32 %v272_v40, %v271_v32  ;;  %v279_v49 = vadd.f32 %v278_v41, %v277_v33  ;;  %v314_v55 = vrot.slane %v313_v47, 1  ;;  %v309_v57 = vadd.f32 %v308_v51, %v307_v43 }
  0x7a   : > { %v297_v54 = vadd.f32 %v296_v46, %v295_v38  ;;  %v303_v56 = vadd.f32 %v302_v50, %v301_v42  ;;  %v318_v58 = vrot.slane %v948_v1, 2  ;;  %v319_v59 = vrot.slane %v948_v1, 3 }
  0x7b   : > { %v315_v60 = vadd.f32 %v314_v55, %v313_v47  ;;  %v320_v61 = vrot.slane %v948_v1, 4  ;;  %v321_v62 = vrot.slane %v948_v1, 5  ;;  %v322_v63 = vrot.slane %v948_v1, 6  ;;  %v392_v55 = vld [vmem:[#allocation2] sm:$0x1] }
  0x7c   : > { %v323_v0 = vrot.slane %v948_v1, 7  ;;  %v332_v2 = vmul.f32 %v273_v48, %v948_v1  ;;  %v333_v3 = vmul.f32 %v317_v9, %v279_v49  ;;  %v334_v4 = vmul.f32 %v318_v58, %v285_v52 }
  0x7d   : > { %v335_v5 = vmul.f32 %v319_v59, %v291_v53  ;;  %v336_v6 = vmul.f32 %v320_v61, %v297_v54  ;;  %v337_v7 = vmul.f32 %v321_v62, %v303_v56  ;;  %v338_v8 = vmul.f32 %v322_v63, %v309_v57 }
  0x7e   : > { %v339_v10 = vmul.f32 %v323_v0, %v315_v60  ;;  %v348_v11 = vrot.slane %v333_v3, 7  ;;  %v351_v12 = vrot.slane %v334_v4, 6  ;;  %vm358_vm4 = vcmask 1044484  }
  0x7f   : > { %v354_v13 = vrot.slane %v335_v5, 5  ;;  %v357_v14 = vrot.slane %v336_v6, 4  ;;  %v360_v16 = vrot.slane %v337_v7, 3  ;;  %vm361_vm5 = vcmask 1045509  }
  0x80   : > { %v350_v15 = vsel %vm349_vm1, %v348_v11, %v332_v2  ;;  %v363_v9 = vrot.slane %v338_v8, 2  ;;  %vm364_vm6 = vcmask 1046534   ;;  %v366_v19 = vrot.slane %v339_v10, 1 }
  0x81   : > { %v353_v17 = vsel %vm352_vm2, %v351_v12, %v350_v15  ;;  %vm367_vm7 = vcmask 1047559   ;;  %v265_v25 = vmul.f32 %v256_v22, %v948_v1  ;;  %vm393_vm8 = vcmask 7168  }
  0x82   : > { %v356_v18 = vsel %vm355_vm3, %v354_v13, %v353_v17  ;;  %vm406_vm9 = vcmask 0  }
  0x83   : > { %v359_v20 = vsel %vm358_vm4, %v357_v14, %v356_v18 }
  0x84   : > { %v362_v21 = vsel %vm361_vm5, %v360_v16, %v359_v20 }
  0x85   : > { %v365_v23 = vsel %vm364_vm6, %v363_v9, %v362_v21 }
  0x86   : > { %v368_v24 = vsel %vm367_vm7, %v366_v19, %v365_v23 }
  0x87   : > { %370 = vadd.xlane.f32.xlu0 %v368_v24 }
  0x8b   : > { %266 = vadd.xlane.f32.xlu0 %v265_v25 }
 0x110   : > { %v371_v26 = vpop.xlane.xlu0 %370 }
 0x111   : > { %v372_v27 = vsub.f32 0.0, %v371_v26 }
 0x113   : > { %v383_v28 = vand.u32 2147483647, %v372_v27  ;;  %v382_v41 = vmin.f32 %v372_v27, 0.0 }
 0x114   : > { %v267_v29 = vpop.xlane.xlu0 %266 }
 0x115   : > { %v384_v30 = vsub.f32 0.0, %v383_v28  ;;  %v374_v31 = vand.u32 2147483647, %v267_v29  ;;  %v373_v42 = vmin.f32 %v267_v29, 0.0 }
 0x117   : > { %v385_v32 = vmul.f32 1.442695, %v384_v30  ;;  %v375_v33 = vsub.f32 0.0, %v374_v31 }
 0x119   : > { %598 = vpow2.f32 %v385_v32  ;;  %v376_v34 = vmul.f32 1.442695, %v375_v33 }
 0x11b   : > { %600 = vpow2.f32 %v376_v34 }
 0x126   : > { %v599_v35 = vpop.eup %598 }
 0x127   : > { %v387_v36 = vadd.f32 1.0, %v599_v35 }
 0x128   : > { %v601_v37 = vpop.eup %600 }
 0x129   : > { %602 = vlog2.f32 %v387_v36  ;;  %v378_v38 = vadd.f32 1.0, %v601_v37 }
 0x12b   : > { %604 = vlog2.f32 %v378_v38 }
 0x136   : > { %v603_v39 = vpop.eup %602 }
 0x137   : > { %v389_v1 = vmul.f32 0.6931472, %v603_v39 }
 0x138   : > { %v605_v40 = vpop.eup %604 }
 0x139   : > { %v380_v43 = vmul.f32 0.6931472, %v605_v40  ;;  %v390_v45 = vsub.f32 %v382_v41, %v389_v1 }
 0x13b   : > { %v381_v44 = vsub.f32 %v373_v42, %v380_v43 }
 0x13d   : > { %v391_v46 = vadd.f32 %v390_v45, %v381_v44 }
 0x13f   : > { %v394_v47 = vsel %vm393_vm8, %v391_v46, 0.0 }
 0x140   : > { %395 = vadd.xlane.f32.xlu1 %v394_v47 }
 0x1c9   : > { %v396_v48 = vpop.xlane.xlu1 %395 }
 0x1ca   : > { %v397_v49 = vrot.slane %v396_v48, 4 }
 0x1cc   : > { %v398_v50 = vadd.f32 %v397_v49, %v396_v48 }
 0x1ce   : > { %v399_v51 = vrot.slane %v398_v50, 2 }
 0x1d0   : > { %v400_v52 = vadd.f32 %v399_v51, %v398_v50 }
 0x1d2   : > { %v401_v53 = vrot.slane %v400_v52, 1 }
 0x1d4   : > { %v402_v54 = vadd.f32 %v401_v53, %v400_v52 }
 0x1d6   : > { %537 = vpush %v402_v54 }
 0x207   : > { %s538_s21 = spop %537  ;;  %411 = sbr.rel (%p531_p13) target bundleno = 536 (0x218), region = 52 }
 0x208   : > { %v404_v56 = vstv %s538_s21 }
 0x209   : > { %v405_v57 = vadd.f32 %v404_v56, %v392_v55 }
 0x20b   : > { %407 = vst.msk [vmem:[#allocation2] sm:$0x1] %vm406_vm9, %v405_v57 }
 0x212   : > { %v412_v58 = vld [vmem:[#allocation2] sm:$0x1] }
 0x213   : > { %v413_v59 = vmul.f32 0.0625, %v412_v58 }
 0x215   : > { %v414_v60 = vsub.f32 0.0, %v413_v59 }
 0x217   : > { %415 = vst.msk [vmem:[#allocation9] sm:$0x1] %vm406_vm9, %v414_v60 }
 0x218 PF: > { %p560_p5 = scmp.eq.s32.totalorder %s804_s16, 1  ;;  %s764_s9 = smov [#allocation9]  }
 0x219   : > { %s423_s26 = sshll.u32 %s764_s9, 4  ;;  %s424_s26 = int_to_ptr.vmem [resolvable:$true] %s423_s26 }
 0x21a   : > { %s690_s28 = scalar_lea.vmem %s424_s26, 16  ;;  %s696_s24 = scalar_lea.vmem %s424_s26, 32 }
 0x21b   : > { %p691_p6 = scmp.ne.s32.totalorder %s424_s26, %s690_s28  ;;  %p697_p12 = scmp.lt.s32.totalorder %s424_s26, %s424_s26 }
 0x21c   : > { %p698_p7 = scmp.lt.s32.totalorder %s696_s24, %s690_s28 }
 0x21d   : > { %p692_p9 = pnand %p691_p6, %p560_p5 }
 0x21e   : > { %p699_p0 = por %p698_p7, %p697_p12 }
 0x21f   : > { %p693_p11 = pneg %p692_p9 }
 0x221   : > { %p700_p1 = pnand %p699_p0, %p693_p11 }
 0x223   : > { %703 = shalt.err (!%p700_p1)
}
 0x224   : > { %546 = dma.vmem_to_hbm [thread:$0]  (%p560_p5), %s424_s26, 16, %s990_s3, [#allocation5]  }
 0x225   : > { %739 = dma.done.wait (%p560_p5), [#allocation5], 16  }
 0x226   : > { %741 = vsyncadd (%p560_p5), [#allocation5], 4294967280 }
 0x227 PF: > { %p17_p2 = scmp.ge.s32.totalorder %s807_s17, 4   ;;  %s998_s12 = smov %s748_s13 }
 0x228   : > { %s999_s13 = smov %s752_s14  ;;  %s1000_s14 = smov %s817_s20 }
 0x229   : > { %s1001_s15 = smov %s807_s17  ;;  %19 = sbr.rel (!%p17_p2) target bundleno = 6 (0x6), region = 101 }
 0x22e   :  { %436 = vsyncpa [#allocation4], 1 }
 0x22f   :  { %438 = vsyncpa [#allocation4 + $0x1], 1 }
 0x230   :  { %439 = vsyncpa [#allocation7], 1 }
 0x231   :  { %441 = vsyncpa [#allocation7 + $0x1], 1 }
 0x232   :  { %442 = vsyncpa [#allocation5], 1 }
 0x233   :  { %444 = vsyncpa [#allocation5 + $0x1], 1 }

</bundles_post_ra>
